<compile_context>
chip_gen: v5e
topology: v5e:2x2
jax: 0.10.0
libtpu: 0.0.40
codegen_flags: <defaults>
</compile_context>

<pallas_src>
import functools

import jax
import jax.numpy as jnp
from jax.experimental import pallas as pl
from jax.experimental.pallas import tpu as pltpu


_PAD_LOGIT = -1.0e4  # BCE(-1e4, target=0) == 0 exactly in f32


def _gfl_bce_kernel(scores_ref, targets_ref, out_ref, *, lane_chunks):
    j = pl.program_id(1)          # class tile
    k = pl.program_id(2)          # branch (innermost -> targets block is reused)

    # Stable BCE-with-logits, reduced over classes into a (tb, 128) lane-partial
    # accumulator.  128-wide chunks keep temporaries small; the slices are
    # 128-lane-aligned views of the block (no relayout, pure VPU/EUP work).
    acc = None
    for g in range(lane_chunks):
        cols = slice(g * 128, (g + 1) * 128)
        x = scores_ref[:, cols].astype(jnp.float32)
        t = targets_ref[:, cols].astype(jnp.float32)
        pe = jnp.maximum(x, 0.0) - x * t + jnp.log1p(jnp.exp(-jnp.abs(x)))
        acc = pe if acc is None else acc + pe

    # Accumulate into the resident output block: its block index depends only on
    # the batch tile, so it stays in VMEM across all (j, k) steps of this tile
    # and is written back to HBM exactly once.
    @pl.when(j == 0)
    def _():
        out_ref[k] = acc

    @pl.when(j > 0)
    def _():
        out_ref[k] = out_ref[k] + acc


def _round_up(x, m):
    return (x + m - 1) // m * m


def _vmem_budget():
    """Returns (tile-footprint budget bytes, vmem_limit_bytes or None) per chip."""
    try:
        phys = int(pltpu.get_tpu_info().vmem_capacity_bytes)
        if phys < (8 << 20):
            raise ValueError("implausible VMEM size")
        # v5e/v6e (128 MiB): 32 MiB budget / 64 MiB limit; v7x (64 MiB): 16 / 32.
        return min(phys // 4, 32 << 20), min(phys // 2, 96 << 20)
    except Exception:
        # Conservative fallback that fits v5e's 16 MiB default scoped VMEM.
        return 12 << 20, None


def _largest_divisor_tile(cp, cap=2048):
    """Largest multiple of 128 dividing cp (itself a multiple of 128), <= cap."""
    m = cp // 128
    best = 1
    for d in range(1, m + 1):
        if m % d == 0 and 128 * d <= cap:
            best = d
    return 128 * best


def _pick_tb(batch, num_branches, tc, s_bpe, t_bpe, budget):
    """Largest batch tile whose double-buffered footprint fits the VMEM budget."""
    tb_cap = min(512, _round_up(batch, 32))
    for cand in (512, 256, 128, 64, 32):
        if cand > tb_cap:
            continue
        foot = (2 * cand * tc * (s_bpe + t_bpe)          # 2 double-buffered inputs
                + 2 * num_branches * cand * 128 * 4      # double-buffered output
                + 10 * cand * 128 * 4                    # (tb,128) body temporaries
                + (2 << 20))                             # slack / compiler scratch
        if foot <= budget:
            return cand
    return min(32, tb_cap)


def gfl_triple_logit_bce(scores, targets, dro_lambda=1.0, *,
                         block_b=None, block_c=None):
    """scores: (B, K, C) or (B, C) logits (f32/bf16); targets: (B, C) in {0,1}.
    Returns the scalar f32 DRO-reweighted BCE loss summed over branches."""
    if scores.ndim == 2:
        scores = scores[:, None, :]                  # single-branch case
    B, K, C = scores.shape
    assert targets.shape == (B, C), (scores.shape, targets.shape)

    # Class-axis pad only when C is not lane aligned; pad contributes 0 loss.
    c_pad = (-C) % 128
    if c_pad:
        scores = jnp.pad(scores, ((0, 0), (0, 0), (0, c_pad)),
                         constant_values=_PAD_LOGIT)
        targets = jnp.pad(targets, ((0, 0), (0, c_pad)))
    Cp = C + c_pad

    # Free (contiguous) reshape: branch k occupies columns [k*Cp, (k+1)*Cp).
    scores2d = scores.reshape(B, K * Cp)

    # ---- tile selection, sized from this chip's VMEM -------------------------
    budget, vmem_limit = _vmem_budget()
    tc = block_c if block_c is not None else _largest_divisor_tile(Cp)
    assert tc % 128 == 0 and Cp % tc == 0, (tc, Cp)
    s_bpe = jnp.dtype(scores.dtype).itemsize
    t_bpe = jnp.dtype(targets.dtype).itemsize
    tb = block_b if block_b is not None else _pick_tb(B, K, tc, s_bpe, t_bpe, budget)
    nb = pl.cdiv(B, tb)                              # ragged B handled by OOB drop
    nc = Cp // tc

    kernel = functools.partial(_gfl_bce_kernel, lane_chunks=tc // 128)

    cp_kwargs = dict(dimension_semantics=("parallel", "arbitrary", "arbitrary"))
    if vmem_limit is not None:
        cp_kwargs["vmem_limit_bytes"] = int(vmem_limit)

    partial_losses = pl.pallas_call(
        kernel,
        out_shape=jax.ShapeDtypeStruct((K, B, 128), jnp.float32),
        grid_spec=pltpu.PrefetchScalarGridSpec(
            num_scalar_prefetch=0,
            grid=(nb, nc, K),      # branch innermost -> targets block index unchanged
            in_specs=[
                pl.BlockSpec((tb, tc), lambda i, j, k: (i, k * nc + j)),  # scores
                pl.BlockSpec((tb, tc), lambda i, j, k: (i, j)),           # targets
            ],
            out_specs=pl.BlockSpec((K, tb, 128), lambda i, j, k: (0, i, 0)),
        ),
        compiler_params=pltpu.CompilerParams(**cp_kwargs),
    )(scores2d, targets)

    # ---- tiny DRO softmax combine (K*B values) in JAX -------------------------
    loss_kb = jnp.sum(partial_losses, axis=-1)               # (K, B) per-sample loss
    mx = jnp.max(loss_kb, axis=1, keepdims=True)
    e = jnp.exp((loss_kb - mx) / dro_lambda)
    z = e / jnp.sum(e, axis=1, keepdims=True)
    return jnp.sum(z * loss_kb)


def _reference(scores, targets, dro_lambda=1.0):
    # Pure-JAX mirror of the PyTorch module (for sanity checking).
    scores = scores.astype(jnp.float32)
    targets = targets.astype(jnp.float32)

    def branch_loss(x):
        per = jnp.maximum(x, 0.0) - x * targets + jnp.log1p(jnp.exp(-jnp.abs(x)))
        loss = jnp.sum(per, axis=1)
        mx = jnp.max(loss)
        e = jnp.exp((loss - mx) / dro_lambda)
        return jnp.sum(e / jnp.sum(e) * loss)

    if scores.ndim == 3:
        return sum(branch_loss(scores[:, k]) for k in range(scores.shape[1]))
    return branch_loss(scores)


if __name__ == "__main__":
    key = jax.random.PRNGKey(0)
    k1, k2, k3, k4, k5, k6 = jax.random.split(key, 6)

    # Case 1: triple branch, f32, multi-tile grid (nb=3, nc=3, K=3) with a
    # ragged batch (B=18, tb=8 -> last batch block partially out of bounds).
    B, K, C = 18, 3, 384
    scores = jax.random.normal(k1, (B, K, C), dtype=jnp.float32)
    targets = (jax.random.uniform(k2, (B, C)) > 0.5).astype(jnp.float32)
    out = jax.block_until_ready(
        gfl_triple_logit_bce(scores, targets, 1.0, block_b=8, block_c=128))
    ref = _reference(scores, targets, 1.0)
    assert jnp.allclose(out, ref, rtol=2e-3, atol=1e-2), (out, ref)

    # Case 2: 2-D scores (single branch), C=100 -> wrapper pad path, auto tiles.
    B2, C2 = 8, 100
    scores2 = jax.random.normal(k3, (B2, C2), dtype=jnp.float32)
    targets2 = (jax.random.uniform(k4, (B2, C2)) > 0.5).astype(jnp.float32)
    out2 = jax.block_until_ready(gfl_triple_logit_bce(scores2, targets2, 2.0))
    ref2 = _reference(scores2, targets2, 2.0)
    assert jnp.allclose(out2, ref2, rtol=2e-3, atol=1e-2), (out2, ref2)

    # Case 3: bf16 scores + bf16 targets (half the HBM traffic), auto tiles.
    B3, K3, C3 = 16, 3, 256
    scores3 = jax.random.normal(k5, (B3, K3, C3), dtype=jnp.bfloat16)
    targets3 = (jax.random.uniform(k6, (B3, C3)) > 0.5).astype(jnp.bfloat16)
    out3 = jax.block_until_ready(gfl_triple_logit_bce(scores3, targets3, 1.0))
    ref3 = _reference(scores3, targets3, 1.0)
    assert jnp.allclose(out3, ref3, rtol=5e-3, atol=5e-2), (out3, ref3)

    print("KERNEL_OK")
</pallas_src>

<mosaic_0001>
module attributes {stable_mosaic.version = 11 : i64} {
  func.func @_gfl_bce_kernel(%arg0: i32, %arg1: i32, %arg2: i32, %arg3: memref<8x128xf32, #tpu.memory_space<vmem>>, %arg4: memref<8x128xf32, #tpu.memory_space<vmem>>, %arg5: memref<3x8x128xf32, #tpu.memory_space<vmem>>) attributes {dimension_semantics = [#tpu.dimension_semantics<parallel>, #tpu.dimension_semantics<arbitrary>, #tpu.dimension_semantics<arbitrary>], iteration_bounds = array<i64: 3, 3, 3>, scalar_prefetch = 0 : i64, scratch_operands = 0 : i64, tpu.core_type = #tpu.core_type<tc>, window_params = [{transform_indices = @transform_0, window_bounds = array<i64: 8, 128>}, {transform_indices = @transform_1, window_bounds = array<i64: 8, 128>}, {transform_indices = @transform_2, window_bounds = array<i64: 3, 8, 128>}]} {
    %c0 = arith.constant 0 : index
    %c0_0 = arith.constant 0 : index
    %0 = vector.load %arg3[%c0, %c0_0] : memref<8x128xf32, #tpu.memory_space<vmem>>, vector<8x128xf32>
    %c0_1 = arith.constant 0 : index
    %c0_2 = arith.constant 0 : index
    %1 = vector.load %arg4[%c0_1, %c0_2] : memref<8x128xf32, #tpu.memory_space<vmem>>, vector<8x128xf32>
    %cst = arith.constant 0.000000e+00 : f32
    %2 = vector.broadcast %cst : f32 to vector<8x128xf32>
    %3 = arith.maximumf %0, %2 : vector<8x128xf32>
    %4 = arith.mulf %0, %1 : vector<8x128xf32>
    %5 = arith.subf %3, %4 : vector<8x128xf32>
    %6 = math.absf %0 : vector<8x128xf32>
    %cst_3 = arith.constant 0.000000e+00 : f32
    %7 = vector.broadcast %cst_3 : f32 to vector<8x128xf32>
    %8 = arith.subf %7, %6 : vector<8x128xf32>
    %9 = math.exp %8 : vector<8x128xf32>
    %10 = math.log1p %9 : vector<8x128xf32>
    %11 = arith.addf %5, %10 : vector<8x128xf32>
    %c0_i32 = arith.constant 0 : i32
    %12 = arith.cmpi eq, %arg1, %c0_i32 : i32
    %13 = arith.extui %12 : i1 to i32
    %c0_i32_4 = arith.constant 0 : i32
    %14 = arith.cmpi ne, %13, %c0_i32_4 : i32
    scf.if %14 {
      %18 = arith.index_cast %arg2 : i32 to index
      %c0_7 = arith.constant 0 : index
      %c0_8 = arith.constant 0 : index
      %19 = vector.load %arg5[%18, %c0_7, %c0_8] : memref<3x8x128xf32, #tpu.memory_space<vmem>>, vector<1x8x128xf32>
      %20 = vector.shape_cast %19 : vector<1x8x128xf32> to vector<8x128xf32>
      %21 = vector.shape_cast %11 : vector<8x128xf32> to vector<1x8x128xf32>
      tpu.vector_store %arg5[%18, %c0_7, %c0_8], %21 {strides = array<i32>} : memref<3x8x128xf32, #tpu.memory_space<vmem>>, vector<1x8x128xf32>,
    } else {
    }
    %c0_i32_5 = arith.constant 0 : i32
    %15 = arith.cmpi sgt, %arg1, %c0_i32_5 : i32
    %16 = arith.extui %15 : i1 to i32
    %c0_i32_6 = arith.constant 0 : i32
    %17 = arith.cmpi ne, %16, %c0_i32_6 : i32
    scf.if %17 {
      %18 = arith.index_cast %arg2 : i32 to index
      %c0_7 = arith.constant 0 : index
      %c0_8 = arith.constant 0 : index
      %19 = vector.load %arg5[%18, %c0_7, %c0_8] : memref<3x8x128xf32, #tpu.memory_space<vmem>>, vector<1x8x128xf32>
      %20 = vector.shape_cast %19 : vector<1x8x128xf32> to vector<8x128xf32>
      %21 = arith.addf %20, %11 : vector<8x128xf32>
      %22 = arith.index_cast %arg2 : i32 to index
      %c0_9 = arith.constant 0 : index
      %c0_10 = arith.constant 0 : index
      %23 = vector.load %arg5[%22, %c0_9, %c0_10] : memref<3x8x128xf32, #tpu.memory_space<vmem>>, vector<1x8x128xf32>
      %24 = vector.shape_cast %23 : vector<1x8x128xf32> to vector<8x128xf32>
      %25 = vector.shape_cast %21 : vector<8x128xf32> to vector<1x8x128xf32>
      tpu.vector_store %arg5[%22, %c0_9, %c0_10], %25 {strides = array<i32>} : memref<3x8x128xf32, #tpu.memory_space<vmem>>, vector<1x8x128xf32>,
    } else {
    }
    return
  }
  func.func @transform_0(%arg0: i32, %arg1: i32, %arg2: i32) -> (i32, i32) {
    %c3_i32 = arith.constant 3 : i32
    %0 = arith.muli %arg2, %c3_i32 : i32
    %1 = arith.addi %0, %arg1 : i32
    %c0_i32 = arith.constant 0 : i32
    return %arg0, %1 : i32, i32
  }
  func.func @transform_1(%arg0: i32, %arg1: i32, %arg2: i32) -> (i32, i32) {
    %c0_i32 = arith.constant 0 : i32
    return %arg0, %arg1 : i32, i32
  }
  func.func @transform_2(%arg0: i32, %arg1: i32, %arg2: i32) -> (i32, i32, i32) {
    %c0_i32 = arith.constant 0 : i32
    %c0_i32_0 = arith.constant 0 : i32
    %c0_i32_1 = arith.constant 0 : i32
    return %c0_i32, %arg0, %c0_i32_0 : i32, i32, i32
  }
}

</mosaic_0001>

<bundles_post_ra>
// kernel: tpu_custom_call.1
= control target key start
LH: loop header
LB: loop body
LE: loop exit
PB: predicated region body
PF: predicated region fallthrough
CT: control target
= control target key end

     0   :  { %s1119_s0 = inlined_call_operand.hbm [shape: f32[18,1152], index: 0, kind: input, shape index: {}]   ;;  %s1120_s1 = inlined_call_operand.hbm [shape: f32[18,384], index: 1, kind: input, shape index: {}]   ;;  %s1121_s2 = inlined_call_operand.hbm [shape: f32[3,18,128], index: 2, kind: output, shape index: {}]  }
   0x1   :  { %1131 = sst [smem:[#allocation19_spill]] %s1119_s0 }
   0x2   :  { %1132 = sst [smem:[#allocation20_spill]] %s1121_s2 }
   0x3   :  { %7 = vsyncpa [#allocation3], 0 }
   0x4   :  { %9 = vsyncpa [#allocation3 + $0x1], 0 }
   0x5   :  { %10 = vsyncpa [#allocation6], 0 }
   0x6   :  { %12 = vsyncpa [#allocation6 + $0x1], 0 }
   0x7   :  { %13 = vsyncpa [#allocation4], 0 }
   0x8   :  { %15 = vsyncpa [#allocation4 + $0x1], 0  ;;  %s829_s9 = smov 0   ;;  %s831_s10 = smov 0  }
   0x9   :  { %s833_s11 = smov 0   ;;  %s835_s12 = smov 0  }
   0xa   :  { %s837_s13 = smov 0   ;;  %s839_s14 = smov 0  }
   0xb   :  { %s841_s15 = smov 0   ;;  %s843_s16 = smov 0  }
   0xc   :  { %s845_s17 = smov 0   ;;  %s847_s18 = smov 0  }
   0xd   :  { %s849_s19 = smov 0   ;;  %s851_s20 = smov 0  }
   0xe   :  { %s853_s21 = smov 0   ;;  %s855_s22 = smov 0  }
   0xf   :  { %s857_s23 = smov 0   ;;  %s859_s24 = smov 0  }
  0x10 LB: > { %1133 = sst [smem:[#allocation11_spill]] %s757_s11  ;;  %s1122_s25 = sadd.s32 4294967295, %s809_s24   ;;  %s809_s24 = sphi %s859_s24, %s21_s24   ;;  %s805_s23 = sphi %s857_s23, %s1175_s23   ;;  %s801_s22 = sphi %s855_s22, %s1174_s22   ;;  %s797_s21 = sphi %s853_s21, %s1160_s21   ;;  %s793_s20 = sphi %s851_s20, %s1173_s20   ;;  %s789_s19 = sphi %s849_s19, %s1172_s19   ;;  %s785_s18 = sphi %s847_s18, %s1159_s18   ;;  %s781_s17 = sphi %s845_s17, %s1171_s17   ;;  %s777_s16 = sphi %s843_s16, %s1170_s16   ;;  %s773_s15 = sphi %s841_s15, %s1169_s15   ;;  %s769_s14 = sphi %s839_s14, %s1168_s14   ;;  %s765_s13 = sphi %s837_s13, %s1167_s13   ;;  %s761_s12 = sphi %s835_s12, %s1166_s12   ;;  %s757_s11 = sphi %s833_s11, %s1156_s11   ;;  %s753_s10 = sphi %s831_s10, %s1165_s10   ;;  %s749_s9 = sphi %s829_s9, %s1163_s9  }
  0x11   : > { %1134 = sst [smem:[#allocation12_spill]] %s781_s17  ;;  %s33_s27 = sadd.s32 1, %s797_s21 }
  0x12   : > { %1135 = sst [smem:[#allocation13_spill]] %s797_s21  ;;  %s36_s28 = sadd.s32 1, %s801_s22 }
  0x13   : > { %p34_p0 = scmp.ge.s32.totalorder %s33_s27, 3  ;;  %s40_s29 = sadd.s32 1, %s805_s23 }
  0x14   : > { %s44_s30 = smul.u32 3, %s797_s21  ;;  %s53_s3 = sadd.s32 1, %s781_s17 }
  0x15   : > { %s1177_s27 = smov (%p34_p0, %s33_s27), 0  ;;  %s1179_s28 = smov (!%p34_p0, %s36_s28), %s801_s22 }
  0x16   : > { %1136 = sst [smem:[#allocation14_spill]] %s1177_s27  ;;  %s920_s4 = sadd.s32 %s801_s22, %s44_s30 }
  0x17   : > { %s46_s5 = smul.u32 3, %s1177_s27  ;;  %p38_p1 = scmp.ge.s32.totalorder %s1179_s28, 3 }
  0x18   : > { %p60_p2 = scmp.ne.s32.totalorder %s781_s17, %s777_s16  ;;  %p61_p3 = scmp.eq.s32.totalorder %s809_s24, 0 }
  0x19   : > { %p66_p4 = scmp.ne.s32.totalorder %s777_s16, %s773_s15  ;;  %s1181_s28 = smov (%p38_p1, %s1179_s28), 0 }
  0x1a   : > { %1137 = sst [smem:[#allocation15_spill]] %s1181_s28  ;;  %s1183_s29 = smov (!%p38_p1, %s40_s29), %s805_s23 }
  0x1b   : > { %s47_s6 = sadd.s32 %s46_s5, %s1181_s28  ;;  %p934_p5 = por %p61_p3, %p60_p2 }
  0x1c   : > { %p42_p6 = scmp.ge.s32.totalorder %s1183_s29, 3  ;;  %s49_s8 = ssub.s32 %s920_s4, %s47_s6 }
  0x1d   : > { %p941_p7 = scmp.eq.s32.totalorder %s1122_s25, 0  ;;  %s77_s15 = ssub.s32 %s801_s22, %s1181_s28 }
  0x1e   : > { %s1185_s29 = smov (%p42_p6, %s1183_s29), 0  ;;  %s107_s6 = sadd.s32 1, %s757_s11 }
  0x1f   : > { %1140 = sst [smem:[#allocation16_spill]] %s1185_s29  ;;  %p951_p8 = por %p941_p7, %p66_p4 }
  0x20   : > { %s48_s26 = ssub.s32 %s805_s23, %s1185_s29  ;;  %p117_p9 = scmp.ne.s32.totalorder %s757_s11, %s753_s10 }
  0x21   : > { %s50_s25 = sor.u32 %s49_s8, %s48_s26  ;;  %s960_s27 = sor.u32 %s77_s15, %s48_s26 }
  0x22   : > { %p51_p10 = scmp.eq.s32.totalorder %s50_s25, 0  ;;  %p79_p11 = scmp.eq.s32.totalorder %s960_s27, 0 }
  0x23   : > { %p105_p12 = scmp.eq.s32.totalorder %s48_s26, 0  ;;  %s1142_s28 = sadd.s32 4294967295, %s809_s24  }
  0x24   : > { %p118_p13 = scmp.eq.s32.totalorder %s1142_s28, 26  ;;  %p123_p1 = scmp.ne.s32.totalorder %s753_s10, %s749_s9 }
  0x25   : > { %s966_s21 = scalar_select %p51_p10, %s781_s17, %s53_s3  }
  0x26   : > { %s969_s2 = scalar_select %p105_p12, %s757_s11, %s107_s6  }
  0x27   : > { %1143 = sst [smem:[#allocation17_spill]] %s966_s21  ;;  %p971_p0 = por %p118_p13, %p117_p9 }
  0x28   : > { %1144 = sst [smem:[#allocation18_spill]] %s969_s2  ;;  %s1146_s8 = sadd.s32 4294967294, %s809_s24  }
  0x29   : > { %p124_p2 = scmp.eq.s32.totalorder %s1146_s8, 26  ;;  %p1130_p4 = scmp.lt.s32.totalorder %s809_s24, 27 }
  0x2a   : > { %s144_s15 = sand.u32 1, %s781_s17   ;;  %s426_s28 = smul.u32 9, %s805_s23 }
  0x2b   : > { %p981_p6 = por %p124_p2, %p123_p1  ;;  %s412_s26 = sshll.u32 %s144_s15, 3 }
  0x2c   : > { %p436_p9 = pnand %p1130_p4, %p934_p5  ;;  %s154_s3 = sadd.s32 %s426_s28, %s920_s4 }
  0x2d   : > { %s148_s6 = scalar_lea.vmem [#allocation2], %s412_s26  ;;  %s413_s21 = sshll.u32 %s154_s3, 3 }
  0x2e   : > { %s160_s8 = sshll.u32 %s148_s6, 4  ;;  %s1148_s0 = sld [smem:[#allocation19_spill]]  ;;  %s161_s8 = int_to_ptr.vmem [resolvable:$true] %s160_s8 }
  0x2f   : > { %p416_p5 = scmp.ge.s32.totalorder %s809_s24, 1  ;;  %p186_p10 = scmp.lt.s32.totalorder %s809_s24, 28 }
  0x30   : > { %s145_s4 = scalar_lea.sflag [#allocation3], %s144_s15  ;;  %s81_s28 = sadd.s32 1, %s769_s14 }
  0x31   : > { %p996_p12 = pnand %p416_p5, %p186_p10  ;;  %p88_p13 = scmp.ne.s32.totalorder %s769_s14, %s765_s13 }
  0x32   : > { %s1004_s3 = scalar_select %p79_p11, %s769_s14, %s81_s28  }
  0x33   : > { %p94_p1 = scmp.ne.s32.totalorder %s765_s13, %s761_s12  ;;  %s167_s2 = sand.u32 1, %s769_s14  }
  0x34   : > { %s156_s7 = scalar_lea.hbm %s1148_s0, %s413_s21  ;;  %s427_s17 = smul.u32 3, %s805_s23 }
  0x35   : > { %s158_s11 = sshll.u32 %s156_s7, 4  ;;  %p90_p2 = por %p88_p13, %p61_p3  ;;  %s159_s11 = int_to_ptr.hbm [resolvable:$true] %s158_s11 }
  0x36   : > { %438 = dma.hbm_to_vmem [thread:$0]  (!%p436_p9), %s159_s11, 128, %s161_s8, %s145_s4  }
  0x37   : > { %p1016_p4 = por %p94_p1, %p941_p7  ;;  %s414_s11 = sshll.u32 %s167_s2, 3 }
  0x38   : > { %s175_s15 = sadd.s32 %s801_s22, %s427_s17  ;;  %s171_s8 = scalar_lea.vmem [#allocation5], %s414_s11 }
  0x39   : > { %s415_s6 = sshll.u32 %s175_s15, 3  ;;  %s181_s7 = sshll.u32 %s171_s8, 4  ;;  %s182_s7 = int_to_ptr.vmem [resolvable:$true] %s181_s7 }
  0x3a   : > { %s177_s28 = scalar_lea.hbm %s1120_s1, %s415_s6  ;;  %p1151_p11 = scmp.lt.s32.totalorder %s809_s24, 27 }
  0x3b   : > { %s179_s12 = sshll.u32 %s177_s28, 4  ;;  %s168_s0 = scalar_lea.sflag [#allocation6], %s167_s2  ;;  %s180_s12 = int_to_ptr.hbm [resolvable:$true] %s179_s12 }
  0x3c   : > { %p439_p9 = pnand %p1151_p11, %p90_p2  ;;  %190 = sbr.rel (%p996_p12) target bundleno = 132 (0x84), region = 28 }
  0x3d   : > { %s192_s30 = sand.u32 (!%p996_p12), 1, %s777_s16  }
  0x3e   : > { %441 = dma.hbm_to_vmem [thread:$0]  (!%p439_p9), %s180_s12, 128, %s182_s7, %s168_s0  }
  0x3f   : > { %s417_s17 = sshll.u32 (!%p996_p12), %s192_s30, 3  ;;  %s193_s11 = scalar_lea.sflag (!%p996_p12), [#allocation3], %s192_s30 }
  0x40   : > { %s196_s15 = scalar_lea.vmem (!%p996_p12), [#allocation2], %s417_s17 }
  0x41   : > { %736 = dma.done.wait (%p951_p8), %s193_s11, 128  }
  0x42   : > { %738 = vsyncadd (%p951_p8), %s193_s11, 4294967168  ;;  %s202_s6 = sand.u32 1, %s765_s13  }
  0x43   : > { %s418_s8 = sshll.u32 %s202_s6, 3  ;;  %s203_s2 = scalar_lea.sflag [#allocation6], %s202_s6 }
  0x44   : > { %s206_s0 = scalar_lea.vmem [#allocation5], %s418_s8 }
  0x45   : > { %740 = dma.done.wait (%p1016_p4), %s203_s2, 128  }
  0x46   : > { %742 = vsyncadd (%p1016_p4), %s203_s2, 4294967168  ;;  %s230_s26 = sand.u32 1, %s753_s10   ;;  %v235_v0 = vld [vmem:[%s196_s15] sm:$0xff]  ;;  %v236_v7 = vld [vmem:[%s206_s0] sm:$0xff]  ;;  %p419_p3 = scmp.ne.s32.totalorder %s789_s19, 0 }
  0x47   : > { %s428_s7 = smul.u32 24, %s230_s26  ;;  %v240_v1 = vand.u32 2147483647, %v235_v0  ;;  %v237_v9 = vmax.f32 %v235_v0, 0.0  ;;  %v238_v10 = vmul.f32 %v236_v7, %v235_v0  ;;  %s420_s21 = sshll.u32 (!%p419_p3), %s785_s18, 3 }
  0x49   : > { %v241_v2 = vsub.f32 0.0, %v240_v1  ;;  %v239_v14 = vsub.f32 %v237_v9, %v238_v10  ;;  %s232_s5 = scalar_lea.vmem [#allocation7], %s428_s7 }
  0x4a   : > { %s259_s27 = scalar_lea.vmem (!%p419_p3), %s232_s5, %s420_s21 [#allocation7] }
  0x4b   : > { %v242_v3 = vmul.f32 1.442695, %v241_v2 }
  0x4d   : > { %579 = vpow2.f32 %v242_v3 }
  0x53   : > { %v580_v4 = vpop.eup %579 }
  0x54   : > { %v244_v5 = vadd.f32 1.0, %v580_v4  ;;  %v247_v6 = vmul.f32 -0.5, %v580_v4  ;;  %v250_v11 = vand.u32 2147483647, %v580_v4 }
  0x56   : > { %581 = vlog2.f32 %v244_v5  ;;  %v248_v8 = vadd.f32 1.0, %v247_v6  ;;  %vm251_vm0 = vcmp.lt.f32.partialorder %v250_v11, 0.0004427343 }
  0x58   : > { %v249_v12 = vmul.f32 %v580_v4, %v248_v8 }
  0x5c   : > { %v582_v13 = vpop.eup %581  ;;  %257 = sbr.rel (%p419_p3) target bundleno = 99 (0x63), region = 40 }
  0x5d   : > { %v246_v15 = vmul.f32 0.6931472, %v582_v13 }
  0x5f   : > { %v252_v16 = vsel %vm251_vm0, %v249_v12, %v246_v15 }
  0x60   : > { %v253_v17 = vadd.f32 %v252_v16, %v239_v14 }
  0x62   : > { %260 = vst [vmem:[%s259_s27] sm:$0xff] %v253_v17 }
  0x63 PF: > { %p421_p7 = scmp.le.s32.totalorder %s789_s19, 0 }
  0x64   : > { %s422_s4 = sshll.u32 (!%p421_p7), %s785_s18, 3 }
  0x65   : > { %264 = sbr.rel (%p421_p7) target bundleno = 110 (0x6e), region = 44  ;;  %s266_s28 = scalar_lea.vmem (!%p421_p7), %s232_s5, %s422_s4 [#allocation7] }
  0x6a   : > { %v267_v18 = vld [vmem:[%s266_s28] sm:$0xff] }
  0x6b   : > { %v268_v19 = vadd.f32 %v267_v18, %v253_v17 }
  0x6d   : > { %269 = vst [vmem:[%s266_s28] sm:$0xff] %v268_v19 }
  0x6e PF: > { %s423_s12 = sshll.u32 %s793_s20, 3  ;;  %s1152_s11 = sld [smem:[#allocation20_spill]] }
  0x6f   : > { %s282_s8 = sshll.u32 %s232_s5, 4  ;;  %s271_s19 = scalar_lea.sflag [#allocation4], %s230_s26  ;;  %s283_s8 = int_to_ptr.vmem [resolvable:$true] %s282_s8 }
  0x74   : > { %s1153_s6 = smov %s1152_s11  ;;  %s281_s15 = scalar_lea.hbm %s1152_s11, %s423_s12 }
  0x75   : > { %s284_s2 = sshll.u32 %s281_s15, 4  ;;  %s663_s20 = scalar_lea.hbm %s1153_s6, 72  ;;  %s285_s2 = int_to_ptr.hbm [resolvable:$true] %s284_s2 }
  0x76   : > { %s657_s18 = sshra.s32 %s285_s2, 4  ;;  %s658_s18 = int_to_ptr.hbm [resolvable:$true] %s657_s18 }
  0x77   : > { %s659_s0 = scalar_lea.hbm %s658_s18, 24  ;;  %p664_p10 = scmp.lt.s32.totalorder %s658_s18, %s1153_s6 }
  0x78   : > { %p660_p8 = scmp.ne.s32.totalorder %s658_s18, %s659_s0  ;;  %p665_p12 = scmp.lt.s32.totalorder %s663_s20, %s659_s0 }
  0x7a   : > { %p661_p4 = pnand %p660_p8, %p971_p0  ;;  %p666_p13 = por %p665_p12, %p664_p10 }
  0x7c   : > { %p662_p5 = pneg %p661_p4 }
  0x7e   : > { %p667_p1 = pnand %p666_p13, %p662_p5 }
  0x80   : > { %670 = shalt.err (!%p667_p1)
}
  0x81   : > { %s811_s26 = smov 128   ;;  %s812_s5 = smov 384  }
  0x82   : > { %s813_s28 = smov 8  }
  0x83   : > { %433 = dma.vmem_to_hbm [thread:$0]  (%p971_p0), %s283_s8, 384, %s285_s2, %s271_s19, %s811_s26, %s812_s5, %s813_s28  }
  0x84 PF: > { %p447_p2 = scmp.ge.s32.totalorder %s809_s24, 2  ;;  %s299_s12 = sand.u32 1, %s749_s9  }
  0x85   : > { %s300_s30 = scalar_lea.sflag [#allocation4], %s299_s12 }
  0x86   : > { %p443_p11 = pnand %p447_p2, %p981_p6 }
  0x88   : > { %p444_p9 = pneg %p443_p11 }
  0x8a   : > { %744 = dma.done.wait (%p444_p9), %s300_s30, 384  }
  0x8b   : > { %746 = vsyncadd (%p444_p9), %s300_s30, 4294966912  ;;  %s21_s24 = sadd.s32 1, %s809_s24   ;;  %s1155_s29 = sld [smem:[#allocation11_spill]] }
  0x8c   : > { %p1066_p3 = scmp.ge.s32.totalorder %s21_s24, 29   ;;  %s1156_s11 = sld [smem:[#allocation18_spill]] }
  0x8d   : > { %s1157_s8 = sld [smem:[#allocation12_spill]]  ;;  %s1163_s9 = smov %s753_s10 }
  0x8e   : > { %s1158_s25 = sld [smem:[#allocation17_spill]]  ;;  %s1166_s12 = smov %s765_s13 }
  0x8f   : > { %s1159_s18 = sld [smem:[#allocation13_spill]]  ;;  %s1167_s13 = smov %s769_s14 }
  0x90   : > { %s1160_s21 = sld [smem:[#allocation14_spill]]  ;;  %s1168_s14 = smov %s1004_s3 }
  0x91   : > { %s1161_s2 = sld [smem:[#allocation15_spill]]  ;;  %s1165_s10 = smov %s1155_s29 }
  0x92   : > { %s1162_s0 = sld [smem:[#allocation16_spill]]  ;;  %s1169_s15 = smov %s777_s16 }
  0x93   : > { %s1170_s16 = smov %s1157_s8  ;;  %s1172_s19 = smov %s801_s22 }
  0x94   : > { %s1171_s17 = smov %s1158_s25  ;;  %s1173_s20 = smov %s805_s23 }
  0x95   :  { %20 = sbr.rel (!%p1066_p3) target bundleno = 16 (0x10), region = 96 }
  0x97   : > { %s1174_s22 = smov %s1161_s2 }
  0x98   : > { %s1175_s23 = smov %s1162_s0 }
  0x9a   :  { %306 = vsyncpa [#allocation3], 1 }
  0x9b   :  { %308 = vsyncpa [#allocation3 + $0x1], 1 }
  0x9c   :  { %309 = vsyncpa [#allocation6], 1 }
  0x9d   :  { %311 = vsyncpa [#allocation6 + $0x1], 1 }
  0x9e   :  { %312 = vsyncpa [#allocation4], 1 }
  0x9f   :  { %314 = vsyncpa [#allocation4 + $0x1], 1 }

</bundles_post_ra>
